<compile_context>
chip_gen: v5e
topology: v5e:2x2
jax: 0.10.0
libtpu: 0.0.40
codegen_flags: <defaults>
</compile_context>

<pallas_src>
import jax
import jax.numpy as jnp
from jax.experimental import pallas as pl
from jax.experimental.pallas import tpu as pltpu


def _round_up(v, m):
    return ((v + m - 1) // m) * m


# ------------------------------- fused kernel --------------------------------

def _nrb_block_kernel(x_ref, w1_ref, b1_ref, w2_ref, b2_ref,
                      wdT_ref, bd_ref, wu_ref, bu_ref,
                      wt_ref, bt_ref, o_ref, body_ref):
    """One grid step = one RB block applied to one batch tile.

    Shapes (CP = channels padded to 128, CRP = squeeze channels padded to 8):
      x_ref   : (Bb, HW, CP) f32       (index constant across the block axis)
      w1/w2   : (CP, CP)     bf16      b1/b2 : (1, CP)  f32   (streamed per block)
      wdT     : (CRP, CP)    f32       bd    : (CRP, 1) f32
      wu      : (CRP, CP)    f32       bu    : (1, CP)  f32
      wt      : (CP, CP)     bf16      bt    : (1, CP)  f32
      o_ref   : (Bb, HW, CP) f32
      body_ref: (Bb, HW, CP) f32 VMEM scratch, persists across the block axis
    """
    i = pl.program_id(1)
    n_blocks = pl.num_programs(1)
    bb, hw, cp = body_ref.shape

    @pl.when(i == 0)
    def _():
        body_ref[...] = x_ref[...]

    body = body_ref[...]                                   # (Bb, HW, CP) f32
    c0 = body
    flat = body.reshape(bb * hw, cp)                       # layout no-op (HW % 8 == 0)

    # conv1 (1x1) + ReLU, conv2 (1x1): MXU bf16 operands, f32 accumulation.
    h = jnp.dot(flat.astype(jnp.bfloat16), w1_ref[...],
                preferred_element_type=jnp.float32) + b1_ref[...]
    h = jnp.maximum(h, 0.0)
    h = jnp.dot(h.astype(jnp.bfloat16), w2_ref[...],
                preferred_element_type=jnp.float32) + b2_ref[...]
    h = h.reshape(bb, hw, cp)

    # CALayer: global avg pool -> squeeze -> ReLU -> excite -> sigmoid.
    # Tiny M=1 work stays on VPU (broadcast mul) + XLU (reduce) + EUP (sigmoid).
    pooled = jnp.mean(h, axis=1, keepdims=True)                           # (Bb, 1, CP)
    z = jnp.sum(pooled * wdT_ref[...][None], axis=-1, keepdims=True)      # (Bb, CRP, 1)
    z = jnp.maximum(z + bd_ref[...][None], 0.0)
    y = jax.nn.sigmoid(jnp.sum(z * wu_ref[...][None], axis=1, keepdims=True)
                       + bu_ref[...][None])                               # (Bb, 1, CP)

    new_body = h * y + c0                                  # f32 residual add
    body_ref[...] = new_body

    # Tail conv + outer skip only on the last block step (single lane-dense store).
    @pl.when(i == n_blocks - 1)
    def _():
        t = jnp.dot(new_body.reshape(bb * hw, cp).astype(jnp.bfloat16), wt_ref[...],
                    preferred_element_type=jnp.float32) + bt_ref[...]
        o_ref[...] = x_ref[...] + t.reshape(bb, hw, cp)


# ------------------------------ pallas wrapper --------------------------------

def _pick_batch_pack(B, HW):
    """Pack batch elements per grid step so per-dot M >= ~256, keeping >= 2 batch
    grid steps when possible (v7x has 2 TensorCores). Only pack when the
    (Bb, HW) -> (Bb*HW) flatten is a layout no-op (HW % 8 == 0)."""
    if HW % 8 != 0:
        return 1
    bb = 1
    while (B % (bb * 2) == 0) and (B // (bb * 2) >= 2) and (bb * HW < 256):
        bb *= 2
    return bb


def _vmem_budget_bytes(bb, hw, cp, crp):
    """Derive vmem_limit_bytes from the actual footprint instead of a flat number."""
    f32, bf16 = 4, 2
    act = bb * hw * cp * f32
    # one streamed block of weights (double-buffered across the block axis)
    wblk = (2 * cp * cp * bf16 + 2 * 8 * cp * f32
            + 2 * crp * cp * f32 + 8 * 128 * f32 + 8 * cp * f32)
    tail = cp * cp * bf16 + 8 * cp * f32
    est = (2 * act          # x input (double-buffered, constant over block axis)
           + 2 * act        # output (double-buffered)
           + act            # body scratch
           + 2 * wblk + 2 * tail)
    est = int(est * 1.5) + (4 << 20)          # headroom for in-kernel f32/bf16 temporaries
    return max(16 << 20, min(est, 48 << 20))  # cap at 0.75 x v7x's 64 MiB VMEM


def nrb_forward(x_nchw, block_params, wt, bt):
    B, C, H, W = x_nchw.shape
    HW = H * W
    N = len(block_params)
    CR = block_params[0]["wd"].shape[1]
    # Keep CP=128 on v5e (perfect MXU fit); co-design CP=256 on v6e/v7x if the
    # production channel count allows.
    CP = _round_up(C, 128)
    CRP = _round_up(CR, 8)
    Bb = _pick_batch_pack(B, HW)

    # TODO(synk): keep activations token-major (B, HW, C) between layers / fuse this
    # transpose into the producer so it isn't an extra HBM round trip per call.
    x_tok = jnp.transpose(x_nchw, (0, 2, 3, 1)).reshape(B, HW, C)
    x_pad = jnp.pad(x_tok, ((0, 0), (0, 0), (0, CP - C)))

    def pad2(w, r, c):
        return jnp.pad(w, ((0, r - w.shape[0]), (0, c - w.shape[1])))

    # NOTE: padded rows/cols must stay exactly zero — that keeps padded output lanes at 0
    # even though the CALayer gives sigmoid(0)=0.5 in those lanes. Preserve this invariant
    # if weights are ever quantized / re-packed.
    w1s = jnp.stack([pad2(p["w1"], CP, CP) for p in block_params]).astype(jnp.bfloat16)
    b1s = jnp.stack([pad2(p["b1"], 1, CP) for p in block_params])
    w2s = jnp.stack([pad2(p["w2"], CP, CP) for p in block_params]).astype(jnp.bfloat16)
    b2s = jnp.stack([pad2(p["b2"], 1, CP) for p in block_params])
    wdTs = jnp.stack([pad2(p["wd"].T, CRP, CP) for p in block_params])    # (N, CRP, CP)
    bds = jnp.stack([pad2(p["bd"].T, CRP, 1) for p in block_params])      # (N, CRP, 1)
    wus = jnp.stack([pad2(p["wu"], CRP, CP) for p in block_params])       # (N, CRP, CP)
    bus = jnp.stack([pad2(p["bu"], 1, CP) for p in block_params])         # (N, 1, CP)
    wt_p = pad2(wt, CP, CP).astype(jnp.bfloat16)
    bt_p = pad2(bt, 1, CP)

    tok_spec = pl.BlockSpec((Bb, HW, CP), lambda b, i: (b, 0, 0))

    def blk3(shape):   # stream one block's weights per block-axis step (leading N axis squeezed)
        return pl.BlockSpec((None,) + shape, lambda b, i: (i, 0, 0))

    out_pad = pl.pallas_call(
        _nrb_block_kernel,
        out_shape=jax.ShapeDtypeStruct((B, HW, CP), jnp.float32),
        grid=(B // Bb, N),
        in_specs=[
            tok_spec,
            blk3((CP, CP)), blk3((1, CP)),
            blk3((CP, CP)), blk3((1, CP)),
            blk3((CRP, CP)), blk3((CRP, 1)),
            blk3((CRP, CP)), blk3((1, CP)),
            pl.BlockSpec((CP, CP), lambda b, i: (0, 0)),
            pl.BlockSpec((1, CP), lambda b, i: (0, 0)),
        ],
        out_specs=tok_spec,
        scratch_shapes=[pltpu.VMEM((Bb, HW, CP), jnp.float32)],
        compiler_params=pltpu.CompilerParams(
            dimension_semantics=("parallel", "arbitrary"),
            vmem_limit_bytes=_vmem_budget_bytes(Bb, HW, CP, CRP),
        ),
    )(x_pad, w1s, b1s, w2s, b2s, wdTs, bds, wus, bus, wt_p, bt_p)

    out_tok = out_pad[:, :, :C]
    return jnp.transpose(out_tok.reshape(B, H, W, C), (0, 3, 1, 2))


# -------------------------- deterministic parameters --------------------------

def init_params(key, n, filters, reduction=16):
    """Synthetic deterministic init. 1x1 conv weight (Cout,Cin,1,1) is stored
    directly in its token-matmul form (Cin, Cout)."""
    C = filters
    Cr = max(1, C // reduction)

    def conv_w(k, cin, cout):
        bound = 1.0 / jnp.sqrt(cin)
        return jax.random.uniform(k, (cin, cout), jnp.float32, -bound, bound)

    def conv_b(k, cin, cout):
        bound = 1.0 / jnp.sqrt(cin)
        return jax.random.uniform(k, (1, cout), jnp.float32, -bound, bound)

    blocks = []
    for i in range(n):
        ks = jax.random.split(jax.random.fold_in(key, i), 8)
        blocks.append(dict(
            w1=conv_w(ks[0], C, C),  b1=conv_b(ks[1], C, C),
            w2=conv_w(ks[2], C, C),  b2=conv_b(ks[3], C, C),
            wd=conv_w(ks[4], C, Cr), bd=conv_b(ks[5], C, Cr),
            wu=conv_w(ks[6], Cr, C), bu=conv_b(ks[7], Cr, C),
        ))
    kt1, kt2 = jax.random.split(jax.random.fold_in(key, n + 1))
    wt = conv_w(kt1, C, C)
    bt = conv_b(kt2, C, C)
    return blocks, wt, bt


# ------------------------------ pure-JAX reference -----------------------------

def nrb_reference(x_nchw, block_params, wt, bt):
    B, C, H, W = x_nchw.shape
    x_tok = jnp.transpose(x_nchw, (0, 2, 3, 1)).reshape(B, H * W, C)
    body = x_tok
    for p in block_params:
        c0 = body
        h = jnp.maximum(body @ p["w1"] + p["b1"], 0.0)
        h = h @ p["w2"] + p["b2"]
        pooled = jnp.mean(h, axis=1, keepdims=True)
        z = jnp.maximum(pooled @ p["wd"] + p["bd"], 0.0)
        y = jax.nn.sigmoid(z @ p["wu"] + p["bu"])
        body = h * y + c0
    out_tok = x_tok + body @ wt + bt
    return jnp.transpose(out_tok.reshape(B, H, W, C), (0, 3, 1, 2))


# ----------------------------------- main --------------------------------------

if __name__ == "__main__":
    n = 2
    filters = 64          # CALayer reduction=16 -> squeeze channels = 4
    B, H, W = 2, 8, 8

    key = jax.random.PRNGKey(0)
    kx, kp = jax.random.split(key)
    x = jax.random.normal(kx, (B, filters, H, W), jnp.float32)   # NCHW, like PyTorch

    block_params, wt, bt = init_params(kp, n, filters, reduction=16)

    fwd = jax.jit(nrb_forward)
    out = jax.block_until_ready(fwd(x, block_params, wt, bt))

    ref = nrb_reference(x, block_params, wt, bt)
    assert out.shape == x.shape and out.dtype == jnp.float32
    max_err = float(jnp.max(jnp.abs(out - ref)))
    # bf16 MXU operands (f32 accumulation) compound over N blocks -> N-aware tolerance.
    tol = 5e-2 * max(1.0, n / 2.0)
    assert jnp.allclose(out, ref, rtol=tol, atol=tol), f"mismatch vs reference (max err {max_err})"

    print("KERNEL_OK")
</pallas_src>

<mosaic_0001>
module attributes {stable_mosaic.version = 11 : i64} {
  func.func @_nrb_block_kernel(%arg0: i32, %arg1: i32, %arg2: memref<1x64x128xf32, #tpu.memory_space<vmem>>, %arg3: memref<1x128x128xbf16, #tpu.memory_space<vmem>>, %arg4: memref<1x1x128xf32, #tpu.memory_space<vmem>>, %arg5: memref<1x128x128xbf16, #tpu.memory_space<vmem>>, %arg6: memref<1x1x128xf32, #tpu.memory_space<vmem>>, %arg7: memref<1x8x128xf32, #tpu.memory_space<vmem>>, %arg8: memref<1x8x1xf32, #tpu.memory_space<vmem>>, %arg9: memref<1x8x128xf32, #tpu.memory_space<vmem>>, %arg10: memref<1x1x128xf32, #tpu.memory_space<vmem>>, %arg11: memref<128x128xbf16, #tpu.memory_space<vmem>>, %arg12: memref<1x128xf32, #tpu.memory_space<vmem>>, %arg13: memref<1x64x128xf32, #tpu.memory_space<vmem>>, %arg14: memref<1x64x128xf32, #tpu.memory_space<vmem>>) attributes {dimension_semantics = [#tpu.dimension_semantics<parallel>, #tpu.dimension_semantics<arbitrary>], iteration_bounds = array<i64: 2, 2>, scalar_prefetch = 0 : i64, scratch_operands = 1 : i64, tpu.core_type = #tpu.core_type<tc>, window_params = [{transform_indices = @transform_0, window_bounds = array<i64: 1, 64, 128>}, {transform_indices = @transform_1, window_bounds = array<i64: 1, 128, 128>}, {transform_indices = @transform_2, window_bounds = array<i64: 1, 1, 128>}, {transform_indices = @transform_3, window_bounds = array<i64: 1, 128, 128>}, {transform_indices = @transform_4, window_bounds = array<i64: 1, 1, 128>}, {transform_indices = @transform_5, window_bounds = array<i64: 1, 8, 128>}, {transform_indices = @transform_6, window_bounds = array<i64: 1, 8, 1>}, {transform_indices = @transform_7, window_bounds = array<i64: 1, 8, 128>}, {transform_indices = @transform_8, window_bounds = array<i64: 1, 1, 128>}, {pipeline_mode = #tpu.pipeline_mode<synchronous>, transform_indices = @transform_9, window_bounds = array<i64: 128, 128>}, {pipeline_mode = #tpu.pipeline_mode<synchronous>, transform_indices = @transform_10, window_bounds = array<i64: 1, 128>}, {transform_indices = @transform_11, window_bounds = array<i64: 1, 64, 128>}]} {
    %c0_i32 = arith.constant 0 : i32
    %0 = arith.cmpi eq, %arg1, %c0_i32 : i32
    %1 = arith.extui %0 : i1 to i32
    %c0_i32_0 = arith.constant 0 : i32
    %2 = arith.cmpi ne, %1, %c0_i32_0 : i32
    scf.if %2 {
      %c0_39 = arith.constant 0 : index
      %c0_40 = arith.constant 0 : index
      %c0_41 = arith.constant 0 : index
      %64 = vector.load %arg2[%c0_39, %c0_40, %c0_41] : memref<1x64x128xf32, #tpu.memory_space<vmem>>, vector<1x64x128xf32>
      %c0_42 = arith.constant 0 : index
      %c0_43 = arith.constant 0 : index
      %c0_44 = arith.constant 0 : index
      %65 = vector.load %arg14[%c0_42, %c0_43, %c0_44] : memref<1x64x128xf32, #tpu.memory_space<vmem>>, vector<1x64x128xf32>
      tpu.vector_store %arg14[%c0_42, %c0_43, %c0_44], %64 {strides = array<i32>} : memref<1x64x128xf32, #tpu.memory_space<vmem>>, vector<1x64x128xf32>,
    } else {
    }
    %c0 = arith.constant 0 : index
    %c0_1 = arith.constant 0 : index
    %c0_2 = arith.constant 0 : index
    %3 = vector.load %arg14[%c0, %c0_1, %c0_2] : memref<1x64x128xf32, #tpu.memory_space<vmem>>, vector<1x64x128xf32>
    %4 = vector.shape_cast %3 : vector<1x64x128xf32> to vector<64x128xf32>
    %5 = arith.truncf %4 : vector<64x128xf32> to vector<64x128xbf16>
    %c0_3 = arith.constant 0 : index
    %c0_4 = arith.constant 0 : index
    %c0_5 = arith.constant 0 : index
    %6 = vector.load %arg3[%c0_3, %c0_4, %c0_5] : memref<1x128x128xbf16, #tpu.memory_space<vmem>>, vector<1x128x128xbf16>
    %7 = vector.shape_cast %6 : vector<1x128x128xbf16> to vector<128x128xbf16>
    %cst = arith.constant dense<0.000000e+00> : vector<64x128xf32>
    %8 = tpu.matmul %5, %7, %cst {dimension_numbers = #tpu.dot_dimension_numbers<[1], [0], [0], [1], [0, 0, 1, 1], [], []>} : vector<64x128xbf16>, vector<128x128xbf16>, vector<64x128xf32> -> vector<64x128xf32>
    %c0_6 = arith.constant 0 : index
    %c0_7 = arith.constant 0 : index
    %c0_8 = arith.constant 0 : index
    %9 = vector.load %arg4[%c0_6, %c0_7, %c0_8] : memref<1x1x128xf32, #tpu.memory_space<vmem>>, vector<1x1x128xf32>
    %10 = vector.shape_cast %9 : vector<1x1x128xf32> to vector<1x128xf32>
    %11 = vector.broadcast %10 : vector<1x128xf32> to vector<64x128xf32>
    %12 = arith.addf %8, %11 : vector<64x128xf32>
    %cst_9 = arith.constant 0.000000e+00 : f32
    %13 = vector.broadcast %cst_9 : f32 to vector<64x128xf32>
    %14 = arith.maximumf %12, %13 : vector<64x128xf32>
    %15 = arith.truncf %14 : vector<64x128xf32> to vector<64x128xbf16>
    %c0_10 = arith.constant 0 : index
    %c0_11 = arith.constant 0 : index
    %c0_12 = arith.constant 0 : index
    %16 = vector.load %arg5[%c0_10, %c0_11, %c0_12] : memref<1x128x128xbf16, #tpu.memory_space<vmem>>, vector<1x128x128xbf16>
    %17 = vector.shape_cast %16 : vector<1x128x128xbf16> to vector<128x128xbf16>
    %cst_13 = arith.constant dense<0.000000e+00> : vector<64x128xf32>
    %18 = tpu.matmul %15, %17, %cst_13 {dimension_numbers = #tpu.dot_dimension_numbers<[1], [0], [0], [1], [0, 0, 1, 1], [], []>} : vector<64x128xbf16>, vector<128x128xbf16>, vector<64x128xf32> -> vector<64x128xf32>
    %c0_14 = arith.constant 0 : index
    %c0_15 = arith.constant 0 : index
    %c0_16 = arith.constant 0 : index
    %19 = vector.load %arg6[%c0_14, %c0_15, %c0_16] : memref<1x1x128xf32, #tpu.memory_space<vmem>>, vector<1x1x128xf32>
    %20 = vector.shape_cast %19 : vector<1x1x128xf32> to vector<1x128xf32>
    %21 = vector.broadcast %20 : vector<1x128xf32> to vector<64x128xf32>
    %22 = arith.addf %18, %21 : vector<64x128xf32>
    %23 = vector.shape_cast %22 : vector<64x128xf32> to vector<1x64x128xf32>
    %cst_17 = arith.constant dense<0.000000e+00> : vector<1x128xf32>
    %24 = vector.multi_reduction <add>, %23, %cst_17 [1] : vector<1x64x128xf32> to vector<1x128xf32>
    %25 = vector.shape_cast %24 : vector<1x128xf32> to vector<1x1x128xf32>
    %cst_18 = arith.constant 6.400000e+01 : f32
    %26 = vector.broadcast %cst_18 : f32 to vector<1x1x128xf32>
    %27 = arith.divf %25, %26 : vector<1x1x128xf32>
    %c0_19 = arith.constant 0 : index
    %c0_20 = arith.constant 0 : index
    %c0_21 = arith.constant 0 : index
    %28 = vector.load %arg7[%c0_19, %c0_20, %c0_21] : memref<1x8x128xf32, #tpu.memory_space<vmem>>, vector<1x8x128xf32>
    %29 = vector.shape_cast %28 : vector<1x8x128xf32> to vector<8x128xf32>
    %30 = vector.shape_cast %29 : vector<8x128xf32> to vector<1x8x128xf32>
    %31 = vector.broadcast %27 : vector<1x1x128xf32> to vector<1x8x128xf32>
    %32 = arith.mulf %31, %30 : vector<1x8x128xf32>
    %cst_22 = arith.constant dense<0.000000e+00> : vector<1x8xf32>
    %33 = vector.multi_reduction <add>, %32, %cst_22 [2] : vector<1x8x128xf32> to vector<1x8xf32>
    %34 = vector.shape_cast %33 : vector<1x8xf32> to vector<1x8x1xf32>
    %c0_23 = arith.constant 0 : index
    %c0_24 = arith.constant 0 : index
    %c0_25 = arith.constant 0 : index
    %35 = vector.load %arg8[%c0_23, %c0_24, %c0_25] : memref<1x8x1xf32, #tpu.memory_space<vmem>>, vector<1x8x1xf32>
    %36 = vector.shape_cast %35 : vector<1x8x1xf32> to vector<8x1xf32>
    %37 = vector.shape_cast %36 : vector<8x1xf32> to vector<1x8x1xf32>
    %38 = arith.addf %34, %37 : vector<1x8x1xf32>
    %cst_26 = arith.constant 0.000000e+00 : f32
    %39 = vector.broadcast %cst_26 : f32 to vector<1x8x1xf32>
    %40 = arith.maximumf %38, %39 : vector<1x8x1xf32>
    %c0_27 = arith.constant 0 : index
    %c0_28 = arith.constant 0 : index
    %c0_29 = arith.constant 0 : index
    %41 = vector.load %arg9[%c0_27, %c0_28, %c0_29] : memref<1x8x128xf32, #tpu.memory_space<vmem>>, vector<1x8x128xf32>
    %42 = vector.shape_cast %41 : vector<1x8x128xf32> to vector<8x128xf32>
    %43 = vector.shape_cast %42 : vector<8x128xf32> to vector<1x8x128xf32>
    %44 = vector.broadcast %40 : vector<1x8x1xf32> to vector<1x8x128xf32>
    %45 = arith.mulf %44, %43 : vector<1x8x128xf32>
    %cst_30 = arith.constant dense<0.000000e+00> : vector<1x128xf32>
    %46 = vector.multi_reduction <add>, %45, %cst_30 [1] : vector<1x8x128xf32> to vector<1x128xf32>
    %47 = vector.shape_cast %46 : vector<1x128xf32> to vector<1x1x128xf32>
    %c0_31 = arith.constant 0 : index
    %c0_32 = arith.constant 0 : index
    %c0_33 = arith.constant 0 : index
    %48 = vector.load %arg10[%c0_31, %c0_32, %c0_33] : memref<1x1x128xf32, #tpu.memory_space<vmem>>, vector<1x1x128xf32>
    %49 = vector.shape_cast %48 : vector<1x1x128xf32> to vector<1x128xf32>
    %50 = vector.shape_cast %49 : vector<1x128xf32> to vector<1x1x128xf32>
    %51 = arith.addf %47, %50 : vector<1x1x128xf32>
    %52 = arith.negf %51 : vector<1x1x128xf32>
    %53 = math.exp %52 : vector<1x1x128xf32>
    %cst_34 = arith.constant 1.000000e+00 : f32
    %54 = vector.broadcast %cst_34 : f32 to vector<1x1x128xf32>
    %55 = arith.addf %54, %53 : vector<1x1x128xf32>
    %56 = arith.divf %54, %55 : vector<1x1x128xf32>
    %57 = vector.broadcast %56 : vector<1x1x128xf32> to vector<1x64x128xf32>
    %58 = arith.mulf %23, %57 : vector<1x64x128xf32>
    %59 = arith.addf %58, %3 : vector<1x64x128xf32>
    %c0_35 = arith.constant 0 : index
    %c0_36 = arith.constant 0 : index
    %c0_37 = arith.constant 0 : index
    %60 = vector.load %arg14[%c0_35, %c0_36, %c0_37] : memref<1x64x128xf32, #tpu.memory_space<vmem>>, vector<1x64x128xf32>
    tpu.vector_store %arg14[%c0_35, %c0_36, %c0_37], %59 {strides = array<i32>} : memref<1x64x128xf32, #tpu.memory_space<vmem>>, vector<1x64x128xf32>,
    %c1_i32 = arith.constant 1 : i32
    %61 = arith.cmpi eq, %arg1, %c1_i32 : i32
    %62 = arith.extui %61 : i1 to i32
    %c0_i32_38 = arith.constant 0 : i32
    %63 = arith.cmpi ne, %62, %c0_i32_38 : i32
    scf.if %63 {
      %64 = vector.shape_cast %59 : vector<1x64x128xf32> to vector<64x128xf32>
      %65 = arith.truncf %64 : vector<64x128xf32> to vector<64x128xbf16>
      %c0_39 = arith.constant 0 : index
      %c0_40 = arith.constant 0 : index
      %66 = vector.load %arg11[%c0_39, %c0_40] : memref<128x128xbf16, #tpu.memory_space<vmem>>, vector<128x128xbf16>
      %cst_41 = arith.constant dense<0.000000e+00> : vector<64x128xf32>
      %67 = tpu.matmul %65, %66, %cst_41 {dimension_numbers = #tpu.dot_dimension_numbers<[1], [0], [0], [1], [0, 0, 1, 1], [], []>} : vector<64x128xbf16>, vector<128x128xbf16>, vector<64x128xf32> -> vector<64x128xf32>
      %c0_42 = arith.constant 0 : index
      %c0_43 = arith.constant 0 : index
      %68 = vector.load %arg12[%c0_42, %c0_43] : memref<1x128xf32, #tpu.memory_space<vmem>>, vector<1x128xf32>
      %69 = vector.broadcast %68 : vector<1x128xf32> to vector<64x128xf32>
      %70 = arith.addf %67, %69 : vector<64x128xf32>
      %c0_44 = arith.constant 0 : index
      %c0_45 = arith.constant 0 : index
      %c0_46 = arith.constant 0 : index
      %71 = vector.load %arg2[%c0_44, %c0_45, %c0_46] : memref<1x64x128xf32, #tpu.memory_space<vmem>>, vector<1x64x128xf32>
      %72 = vector.shape_cast %70 : vector<64x128xf32> to vector<1x64x128xf32>
      %73 = arith.addf %71, %72 : vector<1x64x128xf32>
      %c0_47 = arith.constant 0 : index
      %c0_48 = arith.constant 0 : index
      %c0_49 = arith.constant 0 : index
      %74 = vector.load %arg13[%c0_47, %c0_48, %c0_49] : memref<1x64x128xf32, #tpu.memory_space<vmem>>, vector<1x64x128xf32>
      tpu.vector_store %arg13[%c0_47, %c0_48, %c0_49], %73 {strides = array<i32>} : memref<1x64x128xf32, #tpu.memory_space<vmem>>, vector<1x64x128xf32>,
    } else {
    }
    return
  }
  func.func @transform_0(%arg0: i32, %arg1: i32) -> (i32, i32, i32) {
    %c0_i32 = arith.constant 0 : i32
    %c0_i32_0 = arith.constant 0 : i32
    %c0_i32_1 = arith.constant 0 : i32
    return %arg0, %c0_i32, %c0_i32_0 : i32, i32, i32
  }
  func.func @transform_1(%arg0: i32, %arg1: i32) -> (i32, i32, i32) {
    %c0_i32 = arith.constant 0 : i32
    %c0_i32_0 = arith.constant 0 : i32
    %c0_i32_1 = arith.constant 0 : i32
    return %arg1, %c0_i32, %c0_i32_0 : i32, i32, i32
  }
  func.func @transform_2(%arg0: i32, %arg1: i32) -> (i32, i32, i32) {
    %c0_i32 = arith.constant 0 : i32
    %c0_i32_0 = arith.constant 0 : i32
    %c0_i32_1 = arith.constant 0 : i32
    return %arg1, %c0_i32, %c0_i32_0 : i32, i32, i32
  }
  func.func @transform_3(%arg0: i32, %arg1: i32) -> (i32, i32, i32) {
    %c0_i32 = arith.constant 0 : i32
    %c0_i32_0 = arith.constant 0 : i32
    %c0_i32_1 = arith.constant 0 : i32
    return %arg1, %c0_i32, %c0_i32_0 : i32, i32, i32
  }
  func.func @transform_4(%arg0: i32, %arg1: i32) -> (i32, i32, i32) {
    %c0_i32 = arith.constant 0 : i32
    %c0_i32_0 = arith.constant 0 : i32
    %c0_i32_1 = arith.constant 0 : i32
    return %arg1, %c0_i32, %c0_i32_0 : i32, i32, i32
  }
  func.func @transform_5(%arg0: i32, %arg1: i32) -> (i32, i32, i32) {
    %c0_i32 = arith.constant 0 : i32
    %c0_i32_0 = arith.constant 0 : i32
    %c0_i32_1 = arith.constant 0 : i32
    return %arg1, %c0_i32, %c0_i32_0 : i32, i32, i32
  }
  func.func @transform_6(%arg0: i32, %arg1: i32) -> (i32, i32, i32) {
    %c0_i32 = arith.constant 0 : i32
    %c0_i32_0 = arith.constant 0 : i32
    %c0_i32_1 = arith.constant 0 : i32
    return %arg1, %c0_i32, %c0_i32_0 : i32, i32, i32
  }
  func.func @transform_7(%arg0: i32, %arg1: i32) -> (i32, i32, i32) {
    %c0_i32 = arith.constant 0 : i32
    %c0_i32_0 = arith.constant 0 : i32
    %c0_i32_1 = arith.constant 0 : i32
    return %arg1, %c0_i32, %c0_i32_0 : i32, i32, i32
  }
  func.func @transform_8(%arg0: i32, %arg1: i32) -> (i32, i32, i32) {
    %c0_i32 = arith.constant 0 : i32
    %c0_i32_0 = arith.constant 0 : i32
    %c0_i32_1 = arith.constant 0 : i32
    return %arg1, %c0_i32, %c0_i32_0 : i32, i32, i32
  }
  func.func @transform_9(%arg0: i32, %arg1: i32) -> (i32, i32) {
    %c0_i32 = arith.constant 0 : i32
    %c0_i32_0 = arith.constant 0 : i32
    %c0_i32_1 = arith.constant 0 : i32
    return %c0_i32, %c0_i32_0 : i32, i32
  }
  func.func @transform_10(%arg0: i32, %arg1: i32) -> (i32, i32) {
    %c0_i32 = arith.constant 0 : i32
    %c0_i32_0 = arith.constant 0 : i32
    %c0_i32_1 = arith.constant 0 : i32
    return %c0_i32, %c0_i32_0 : i32, i32
  }
  func.func @transform_11(%arg0: i32, %arg1: i32) -> (i32, i32, i32) {
    %c0_i32 = arith.constant 0 : i32
    %c0_i32_0 = arith.constant 0 : i32
    %c0_i32_1 = arith.constant 0 : i32
    return %arg0, %c0_i32, %c0_i32_0 : i32, i32, i32
  }
}

</mosaic_0001>

<bundles_post_ra>
// kernel: nrb_forward.1
= control target key start
LH: loop header
LB: loop body
LE: loop exit
PB: predicated region body
PF: predicated region fallthrough
CT: control target
= control target key end

     0   :  { %s1478_s17 = smov 0   ;;  %s1480_s18 = smov 0   ;;  %s1744_s0 = inlined_call_operand.vmem [shape: f32[2,64,128], index: 0, kind: input, shape index: {}]   ;;  %s1745_s1 = inlined_call_operand.vmem [shape: bf16[2,128,128], index: 1, kind: input, shape index: {}]   ;;  %s1746_s2 = inlined_call_operand.vmem [shape: f32[2,1,128], index: 2, kind: input, shape index: {}]   ;;  %s1747_s3 = inlined_call_operand.vmem [shape: bf16[2,128,128], index: 3, kind: input, shape index: {}]   ;;  %s1748_s4 = inlined_call_operand.vmem [shape: f32[2,1,128], index: 4, kind: input, shape index: {}]   ;;  %s1749_s5 = inlined_call_operand.vmem [shape: f32[2,8,128], index: 5, kind: input, shape index: {}]   ;;  %s1750_s6 = inlined_call_operand.vmem [shape: f32[2,8,1], index: 6, kind: input, shape index: {}]   ;;  %s1751_s7 = inlined_call_operand.vmem [shape: f32[2,8,128], index: 7, kind: input, shape index: {}]   ;;  %s1752_s8 = inlined_call_operand.vmem [shape: f32[2,1,128], index: 8, kind: input, shape index: {}]   ;;  %s1753_s9 = inlined_call_operand.vmem [shape: bf16[128,128], index: 9, kind: input, shape index: {}]   ;;  %s1754_s10 = inlined_call_operand.vmem [shape: f32[1,128], index: 10, kind: input, shape index: {}]   ;;  %s1755_s11 = inlined_call_operand.vmem [shape: f32[2,64,128], index: 11, kind: output, shape index: {}]  }
   0x1   :  { %1759 = sst [smem:[#allocation8_spill]] %s1744_s0  ;;  %s1482_s19 = smov 0  }
   0x2   :  { %1760 = sst [smem:[#allocation9_spill]] %s1745_s1  ;;  %s1484_s20 = smov 0  }
   0x3   :  { %s1486_s21 = smov 0  }
   0x4 LB: > { %1761 = sst [smem:[#allocation3_spill]] %s1406_s19  ;;  %s30_s22 = sadd.s32 1, %s1406_s19  ;;  %s1414_s21 = sphi %s1486_s21, %s21_s21   ;;  %s1410_s20 = sphi %s1484_s20, %s1774_s20   ;;  %s1406_s19 = sphi %s1482_s19, %s1773_s19   ;;  %s1402_s18 = sphi %s1480_s18, %s1772_s18   ;;  %s1398_s17 = sphi %s1478_s17, %s1771_s17  }
   0x5   : > { %1762 = sst [smem:[#allocation4_spill]] %s1410_s20  ;;  %s33_s23 = sadd.s32 1, %s1410_s20 }
   0x6   : > { %1763 = sst [smem:[#allocation5_spill]] %s1414_s21  ;;  %p31_p0 = scmp.ge.s32.totalorder %s30_s22, 2 }
   0x7   : > { %p1143_p1 = scmp.ge.s32.totalorder %s1414_s21, 1  ;;  %p420_p2 = scmp.lt.s32.totalorder %s1414_s21, 5 }
   0x8   : > { %s1776_s22 = smov (%p31_p0, %s30_s22), 0  ;;  %s1778_s23 = smov (!%p31_p0, %s33_s23), %s1410_s20 }
   0x9   : > { %1764 = sst [smem:[#allocation6_spill]] %s1776_s22  ;;  %p421_p3 = pnand %p1143_p1, %p420_p2 }
   0xa   : > { %p35_p4 = scmp.ge.s32.totalorder %s1778_s23, 2  ;;  %p491_p5 = scmp.lt.s32.totalorder (!%p421_p3), %s1402_s18, 1 }
   0xb   : > { %424 = sbr.rel (%p421_p3) target bundleno = 864 (0x360), region = 64  ;;  %p496_p6 = scmp.lt.s32.totalorder (!%p421_p3), %s1398_s17, 1 }
   0xc   : > { %s1780_s23 = smov (%p35_p4, %s1778_s23), 0  ;;  %s1766_s0 = sld [smem:[#allocation8_spill]] (!%p421_p3) }
   0xd   : > { %1765 = sst [smem:[#allocation7_spill]] %s1780_s23  ;;  %p1155_p7 = scmp.ne.s32.totalorder (!%p421_p3), %s1398_s17, 0 }
   0xe   : > { %s1767_s1 = sld [smem:[#allocation9_spill]] (!%p421_p3) }
  0x10   : > { %s1782_s18 = smov (!%p491_p5, %s1402_s18), 1 }
  0x11   : > { %s1512_s24 = scalar_select %p496_p6, %s1398_s17, 1 }
  0x12   : > { %s1256_s25 = sshll.u32 %s1782_s18, 6 }
  0x13   : > { %s1517_s28 = scalar_lea.vmem %s1766_s0, %s1256_s25  ;;  %s1257_s29 = sshll.u32 %s1512_s24, 6 }
  0x14   : > { %s1523_s13 = scalar_lea.vmem %s1767_s1, %s1257_s29  ;;  %s1532_s20 = scalar_lea.vmem %s1747_s3, %s1257_s29 }
  0x15   : > { %s1539_s27 = sshll.u32 %s1512_s24, 3  ;;  %s526_s30 = scalar_lea.vmem %s1752_s8, %s1512_s24 }
  0x16   : > { %s515_s15 = scalar_lea.vmem %s1749_s5, %s1539_s27  ;;  %s519_s29 = scalar_lea.vmem %s1750_s6, %s1539_s27 }
  0x17   : > { %s523_s18 = scalar_lea.vmem %s1751_s7, %s1539_s27  ;;  %s1560_s0 = scalar_lea.vmem %s1755_s11, %s1256_s25 }
  0x18   : > { %535 = sbr.rel (%p1155_p7) target bundleno = 38 (0x26), region = 68 }
  0x1d   : > { %v536_v0 = vld [vmem:[%s1517_s28] sm:$0xff]  ;;  %v537_v1 = vld [vmem:[%s1517_s28 + $0x8] sm:$0xff]  ;;  %v538_v2 = vld [vmem:[%s1517_s28 + $0x10] sm:$0xff] }
  0x1e   : > { %544 = vst [vmem:[#allocation2 + $0x30] sm:$0xff] %v536_v0  ;;  %v539_v3 = vld [vmem:[%s1517_s28 + $0x18] sm:$0xff]  ;;  %v540_v4 = vld [vmem:[%s1517_s28 + $0x20] sm:$0xff]  ;;  %v541_v5 = vld [vmem:[%s1517_s28 + $0x28] sm:$0xff] }
  0x1f   : > { %545 = vst [vmem:[#allocation2] sm:$0xff] %v537_v1  ;;  %v542_v6 = vld [vmem:[%s1517_s28 + $0x30] sm:$0xff]  ;;  %v543_v7 = vld [vmem:[%s1517_s28 + $0x38] sm:$0xff] }
  0x20   : > { %546 = vst [vmem:[#allocation2 + $0x18] sm:$0xff] %v538_v2 }
  0x21   : > { %547 = vst [vmem:[#allocation2 + $0x10] sm:$0xff] %v539_v3 }
  0x22   : > { %548 = vst [vmem:[#allocation2 + $0x8] sm:$0xff] %v540_v4 }
  0x23   : > { %549 = vst [vmem:[#allocation2 + $0x20] sm:$0xff] %v541_v5 }
  0x24   : > { %550 = vst [vmem:[#allocation2 + $0x28] sm:$0xff] %v542_v6 }
  0x25   : > { %551 = vst [vmem:[#allocation2 + $0x38] sm:$0xff] %v543_v7 }
  0x26 PF: > { %v1267_v8 = vld [vmem:[%s1523_s13 + $0x38] sm:$0xff]  ;;  %v1266_v9 = vld [vmem:[%s1523_s13 + $0x30] sm:$0xff]  ;;  %v1265_v10 = vld [vmem:[%s1523_s13 + $0x28] sm:$0xff]  ;;  %s1768_s25 = scalar_lea.vmem %s1746_s2, %s1512_s24  ;;  %s1769_s16 = scalar_lea.vmem %s1748_s4, %s1512_s24 }
  0x27   : > { %632 = vmatpush.bf16.msra.mxu0 %v1267_v8  ;;  %1284 = vmatpush.bf16.msra.mxu2 %v1267_v8  ;;  %v1264_v11 = vld [vmem:[%s1523_s13 + $0x20] sm:$0xff]  ;;  %v1263_v12 = vld [vmem:[%s1523_s13 + $0x18] sm:$0xff]  ;;  %v1262_v14 = vld [vmem:[%s1523_s13 + $0x10] sm:$0xff]  ;;  %p1221_p8 = scmp.ne.s32.totalorder %s1398_s17, 1 }
  0x28   : > { %v1275_v13 = vld [vmem:[%s1532_s20 + $0x38] sm:$0xff]  ;;  %v1274_v15 = vld [vmem:[%s1532_s20 + $0x30] sm:$0xff]  ;;  %v1261_v16 = vld [vmem:[%s1523_s13 + $0x8] sm:$0xff] }
  0x29   : > { %741 = vmatpush.bf16.msra.mxu1 %v1275_v13  ;;  %1292 = vmatpush.bf16.msra.mxu3 %v1275_v13  ;;  %v1273_v17 = vld [vmem:[%s1532_s20 + $0x28] sm:$0xff]  ;;  %v1260_v18 = vld [vmem:[%s1523_s13] sm:$0xff]  ;;  %v1582_v19 = vld [vmem:[#allocation2 + $0x30] sm:$0xff] }
  0x2a   : > { %v1584_v20 = vld [vmem:[#allocation2] sm:$0xff]  ;;  %v1586_v21 = vld [vmem:[#allocation2 + $0x8] sm:$0xff]  ;;  %v1595_v26 = vld [vmem:[#allocation2 + $0x18] sm:$0xff] }
  0x2b   : > { %633 = vmatpush.bf16.msra.mxu0 %v1266_v9  ;;  %1285 = vmatpush.bf16.msra.mxu2 %v1266_v9  ;;  %v1588_v22 = vld [vmem:[#allocation2 + $0x20] sm:$0xff]  ;;  %v560_v24 = vpack.c.bf16 %v1584_v20, %v1582_v19  ;;  %v1597_v27 = vld [vmem:[#allocation2 + $0x10] sm:$0xff]  ;;  %v1599_v28 = vld [vmem:[#allocation2 + $0x28] sm:$0xff] }
  0x2c   : > { %v1272_v23 = vld [vmem:[%s1532_s20 + $0x20] sm:$0xff]  ;;  %v562_v25 = vpack.c.bf16 %v1588_v22, %v1586_v21  ;;  %v1601_v29 = vld [vmem:[#allocation2 + $0x38] sm:$0xff]  ;;  %v561_v30 = vpack.c.bf16 %v1597_v27, %v1595_v26  ;;  %v1270_v33 = vld [vmem:[%s1532_s20 + $0x10] sm:$0xff] }
  0x2d   : > { %742 = vmatpush.bf16.msra.mxu1 %v1274_v15  ;;  %1293 = vmatpush.bf16.msra.mxu3 %v1274_v15  ;;  %v563_v31 = vpack.c.bf16 %v1601_v29, %v1599_v28  ;;  %v1271_v32 = vld [vmem:[%s1532_s20 + $0x18] sm:$0xff]  ;;  %v1269_v34 = vld [vmem:[%s1532_s20 + $0x8] sm:$0xff]  ;;  %v1268_v35 = vld [vmem:[%s1532_s20] sm:$0xff] }
  0x2e   : > { %v1367_v37 = vld [vmem:[%s1768_s25] ss:$0 sm:$0xff] }
  0x2f   : > { %634 = vmatpush.bf16.msra.mxu0 %v1265_v10  ;;  %1286 = vmatpush.bf16.msra.mxu2 %v1265_v10  ;;  %v1368_v5 = vld [vmem:[%s1769_s16] ss:$0 sm:$0xff] }
  0x31   : > { %743 = vmatpush.bf16.msra.mxu1 %v1273_v17  ;;  %1294 = vmatpush.bf16.msra.mxu3 %v1273_v17 }
  0x33   : > { %635 = vmatpush.bf16.msra.mxu0 %v1264_v11  ;;  %1287 = vmatpush.bf16.msra.mxu2 %v1264_v11 }
  0x35   : > { %744 = vmatpush.bf16.msra.mxu1 %v1272_v23  ;;  %1295 = vmatpush.bf16.msra.mxu3 %v1272_v23 }
  0x37   : > { %636 = vmatpush.bf16.msra.mxu0 %v1263_v12  ;;  %1288 = vmatpush.bf16.msra.mxu2 %v1263_v12 }
  0x39   : > { %745 = vmatpush.bf16.msra.mxu1 %v1271_v32  ;;  %1296 = vmatpush.bf16.msra.mxu3 %v1271_v32 }
  0x3b   : > { %637 = vmatpush.bf16.msra.mxu0 %v1262_v14  ;;  %1289 = vmatpush.bf16.msra.mxu2 %v1262_v14  ;;  %v1416_v14 = vmov 64.0  }
  0x3c   : > { %1369 = vrcp.f32 %v1416_v14 }
  0x3d   : > { %746 = vmatpush.bf16.msra.mxu1 %v1270_v33  ;;  %1297 = vmatpush.bf16.msra.mxu3 %v1270_v33 }
  0x3f   : > { %638 = vmatpush.bf16.msra.mxu0 %v1261_v16  ;;  %1290 = vmatpush.bf16.msra.mxu2 %v1261_v16 }
  0x41   : > { %747 = vmatpush.bf16.msra.mxu1 %v1269_v34  ;;  %1298 = vmatpush.bf16.msra.mxu3 %v1269_v34 }
  0x42   : > { %v1370_v23 = vpop.eup %1369 }
  0x43   : > { %639 = vmatpush.bf16.msra.mxu0 %v1260_v18  ;;  %1291 = vmatpush.bf16.msra.mxu2 %v1260_v18  ;;  %vm788_vm0 = vweird.f32 %v1370_v23 }
  0x45   : > { %748 = vmatpush.bf16.msra.mxu1 %v1268_v35  ;;  %1299 = vmatpush.bf16.msra.mxu3 %v1268_v35 }
  0x46   : > { %640 = vmatmul.bf16.vlgmr.msra.gmra.mxu0 %v560_v24  ;;  %650 = vmatmul.bf16.vlgmr.msra.gmra.mxu2 %v562_v25 }
  0x56   : > { %645 = vmatmul.bf16.gmra.mxu0 %v561_v30  ;;  %655 = vmatmul.bf16.gmra.mxu2 %v563_v31  ;;  %v784_v30 = vmul.f32 64.0, %v1370_v23 }
  0x58   : > { %v785_v35 = vsub.f32 1.0, %v784_v30 }
  0xc3   : > { %v641_v36 = vpop.f32.mrf.mxu0 }
  0xc4   : > { %v642_v39 = vadd.f32 %v1367_v37, %v641_v36 }
  0xc6   : > { %v661_v42 = vmax.f32 %v642_v39, 0.0 }
  0xc9   : > { %v651_v38 = vpop.f32.mrf.mxu2 }
  0xca   : > { %v652_v44 = vadd.f32 %v1367_v37, %v651_v38  ;;  %v786_v38 = vmul.f32 %v1370_v23, %v785_v35 }
  0xcb   : > { %v643_v40 = vpop.f32.mrf.mxu0 }
  0xcc   : > { %v644_v41 = vadd.f32 %v1367_v37, %v643_v40  ;;  %v665_v49 = vmax.f32 %v652_v44, 0.0 }
  0xce   : > { %v662_v43 = vmax.f32 %v644_v41, 0.0  ;;  %v787_v41 = vadd.f32 %v1370_v23, %v786_v38 }
  0xd0   : > { %v669_v45 = vpack.c.bf16 %v662_v43, %v661_v42  ;;  %v789_v44 = vsel %vm788_vm0, %v1370_v23, %v787_v41 }
  0xd1   : > { %v653_v46 = vpop.f32.mrf.mxu2 }
  0xd2   : > { %v654_v47 = vadd.f32 %v1367_v37, %v653_v46  ;;  %749 = vmatmul.bf16.vlgmr.msra.gmra.mxu1 %v669_v45  ;;  %v791_v46 = vld [vmem:[%s515_s15] sm:$0xff] }
  0xd3   : > { %v646_v48 = vpop.f32.mrf.mxu0 }
  0xd4   : > { %v666_v50 = vmax.f32 %v654_v47, 0.0  ;;  %v647_v53 = vadd.f32 %v1367_v37, %v646_v48 }
  0xd6   : > { %v671_v51 = vpack.c.bf16 %v666_v50, %v665_v49  ;;  %v663_v56 = vmax.f32 %v647_v53, 0.0  ;;  %v1417_v49 = vmov 0   ;;  %v795_v50 = vld [vmem:[%s519_s29] sm:$0xff] }
  0xd7   : > { %1366 = vset.pattern.permute.xlu0 %v1417_v49 }
  0xd8   : > { %759 = vmatmul.bf16.vlgmr.msra.gmra.mxu3 %v671_v51 }
  0xd9   : > { %v656_v52 = vpop.f32.mrf.mxu2 }
  0xda   : > { %v657_v58 = vadd.f32 %v1367_v37, %v656_v52 }
  0xdb   : > { %v648_v54 = vpop.f32.mrf.mxu0 }
  0xdc   : > { %v649_v55 = vadd.f32 %v1367_v37, %v648_v54  ;;  %v667_v62 = vmax.f32 %v657_v58, 0.0  ;;  %v798_v54 = vld [vmem:[%s523_s18] sm:$0xff] }
  0xde   : > { %v664_v57 = vmax.f32 %v649_v55, 0.0 }
  0xe0   : > { %v670_v59 = vpack.c.bf16 %v664_v57, %v663_v56 }
  0xe1   : > { %v658_v60 = vpop.f32.mrf.mxu2 }
  0xe2   : > { %v659_v61 = vadd.f32 %v1367_v37, %v658_v60  ;;  %754 = vmatmul.bf16.gmra.mxu1 %v670_v59 }
  0xe4   : > { %v668_v63 = vmax.f32 %v659_v61, 0.0 }
  0xe6   : > { %v672_v0 = vpack.c.bf16 %v668_v63, %v667_v62  ;;  %v811_v62 = vld [vmem:[%s526_s30] sm:$0x1] }
  0xe8   : > { %764 = vmatmul.bf16.gmra.mxu3 %v672_v0 }
 0x14f   : > { %v750_v1 = vpop.f32.mrf.mxu1 }
 0x150   : > { %v1623_v8 = vadd.f32 %v1368_v5, %v750_v1 }
 0x157   : > { %v752_v2 = vpop.f32.mrf.mxu1 }
 0x158   : > { %v1621_v6 = vadd.f32 %v1368_v5, %v752_v2 }
 0x15a   : > { %v770_v10 = vadd.f32 %v1621_v6, %v1623_v8 }
 0x15b   : > { %v760_v3 = vpop.f32.mrf.mxu3 }
 0x15c   : > { %v1632_v15 = vadd.f32 %v1368_v5, %v760_v3 }
 0x15f   : > { %v755_v4 = vpop.f32.mrf.mxu1 }
 0x160   : > { %v1625_v9 = vadd.f32 %v1368_v5, %v755_v4 }
 0x162   : > { %v771_v12 = vadd.f32 %v770_v10, %v1625_v9 }
 0x163   : > { %v762_v7 = vpop.f32.mrf.mxu3 }
 0x164   : > { %v1636_v24 = vadd.f32 %v1368_v5, %v762_v7 }
 0x167   : > { %v757_v11 = vpop.f32.mrf.mxu1 }
 0x168   : > { %v1630_v13 = vadd.f32 %v1368_v5, %v757_v11 }
 0x16a   : > { %v772_v16 = vadd.f32 %v771_v12, %v1630_v13 }
 0x16b   : > { %v765_v17 = vpop.f32.mrf.mxu3 }
 0x16c   : > { %v773_v18 = vadd.f32 %v772_v16, %v1632_v15  ;;  %v1639_v31 = vadd.f32 %v1368_v5, %v765_v17 }
 0x16e   : > { %v774_v25 = vadd.f32 %v773_v18, %v1636_v24 }
 0x170   : > { %v775_v33 = vadd.f32 %v774_v25, %v1639_v31 }
 0x173   : > { %v767_v32 = vpop.f32.mrf.mxu3 }
 0x174   : > { %v1642_v34 = vadd.f32 %v1368_v5, %v767_v32 }
 0x176   : > { %v776_v36 = vadd.f32 %v775_v33, %v1642_v34 }
 0x178   : > { %v777_v37 = vrot.slane %v776_v36, 4 }
 0x17a   : > { %v778_v39 = vadd.f32 %v777_v37, %v776_v36 }
 0x17c   : > { %v779_v40 = vrot.slane %v778_v39, 2 }
 0x17e   : > { %v780_v42 = vadd.f32 %v779_v40, %v778_v39 }
 0x180   : > { %v781_v43 = vrot.slane %v780_v42, 1 }
 0x182   : > { %v782_v45 = vadd.f32 %v781_v43, %v780_v42 }
 0x184   : > { %v790_v47 = vmul.f32 %v789_v44, %v782_v45 }
 0x186   : > { %v792_v48 = vmul.f32 %v791_v46, %v790_v47 }
 0x188   : > { %793 = vadd.xlane.f32.xlu0 %v792_v48 }
 0x1fb   : > { %v794_v51 = vpop.xlane.xlu0 %793 }
 0x1fc   : > { %v796_v52 = vadd.f32 %v795_v50, %v794_v51 }
 0x1fe   : > { %v797_v53 = vmax.f32 %v796_v52, 0.0 }
 0x200   : > { %801 = vperm.xlu0 %1366, %v797_v53  }
 0x272   : > { %v802_v55 = vpop.permute.xlu0 %801 }
 0x273   : > { %v804_v56 = vmul.f32 %v802_v55, %v798_v54 }
 0x275   : > { %v805_v57 = vrot.slane %v804_v56, 4 }
 0x277   : > { %v806_v58 = vadd.f32 %v805_v57, %v804_v56 }
 0x279   : > { %v807_v59 = vrot.slane %v806_v58, 2 }
 0x27b   : > { %v808_v60 = vadd.f32 %v807_v59, %v806_v58 }
 0x27d   : > { %v809_v61 = vrot.slane %v808_v60, 1 }
 0x27f   : > { %v810_v63 = vadd.f32 %v809_v61, %v808_v60 }
 0x281   : > { %v812_v0 = vadd.f32 %v811_v62, %v810_v63 }
 0x283   : > { %v1220_v1 = vmul.f32 -1.442695, %v812_v0 }
 0x285   : > { %1371 = vpow2.f32 %v1220_v1 }
 0x28b   : > { %v1372_v2 = vpop.eup %1371 }
 0x28c   : > { %v816_v3 = vadd.f32 1.0, %v1372_v2 }
 0x28e   : > { %1373 = vrcp.f32 %v816_v3  ;;  %v828_v10 = vand.u32 2147483648, %v816_v3  ;;  %v826_v12 = vand.u32 2147483647, %v816_v3  ;;  %vm822_vm2 = vweird.f32 %v816_v3 }
 0x290   : > { %v829_v16 = vor.u32 1.1754944e-38, %v828_v10  ;;  %vm827_vm4 = vcmp.eq.f32.partialorder %v826_v12, 8.507059e+37 }
 0x294   : > { %v1374_v4 = vpop.eup %1373 }
 0x295   : > { %v818_v5 = vmul.f32 %v1374_v4, %v816_v3  ;;  %vm823_vm1 = vweird.f32 %v1374_v4 }
 0x296   : > { %vm824_vm3 = vmor %vm822_vm2, %vm823_vm1 }
 0x297   : > { %v819_v7 = vsub.f32 1.0, %v818_v5 }
 0x299   : > { %v820_v11 = vmul.f32 %v1374_v4, %v819_v7 }
 0x29b   : > { %v821_v14 = vadd.f32 %v1374_v4, %v820_v11 }
 0x29d   : > { %v825_v17 = vsel %vm824_vm3, %v1374_v4, %v821_v14 }
 0x29e   : > { %v830_v18 = vsel %vm827_vm4, %v829_v16, %v825_v17 }
 0x29f   : > { %v832_v23 = vperm.slane %v830_v18, 0 }
 0x2a1   : > { %v833_v25 = vmul.f32 %v832_v23, %v1623_v8  ;;  %v834_v30 = vmul.f32 %v832_v23, %v1621_v6  ;;  %v835_v32 = vmul.f32 %v832_v23, %v1625_v9  ;;  %v836_v33 = vmul.f32 %v832_v23, %v1630_v13 }
 0x2a2   : > { %v837_v35 = vmul.f32 %v832_v23, %v1632_v15  ;;  %v838_v36 = vmul.f32 %v832_v23, %v1636_v24  ;;  %v839_v37 = vmul.f32 %v832_v23, %v1639_v31  ;;  %v840_v8 = vmul.f32 %v832_v23, %v1642_v34 }
 0x2a3   : > { %v1673_v38 = vadd.f32 %v833_v25, %v1582_v19  ;;  %v842_v39 = vadd.f32 %v834_v30, %v1584_v20  ;;  %v843_v40 = vadd.f32 %v835_v32, %v1595_v26  ;;  %v844_v6 = vadd.f32 %v836_v33, %v1597_v27 }
 0x2a4   : > { %v845_v9 = vadd.f32 %v837_v35, %v1586_v21  ;;  %v846_v13 = vadd.f32 %v838_v36, %v1588_v22  ;;  %v847_v15 = vadd.f32 %v839_v37, %v1599_v28  ;;  %v848_v19 = vadd.f32 %v840_v8, %v1601_v29 }
 0x2a5   : > { %849 = vst [vmem:[#allocation2 + $0x30] sm:$0xff] %v1673_v38 }
 0x2a6   : > { %850 = vst [vmem:[#allocation2] sm:$0xff] %v842_v39 }
 0x2a7   : > { %851 = vst [vmem:[#allocation2 + $0x18] sm:$0xff] %v843_v40 }
 0x2a8   : > { %852 = vst [vmem:[#allocation2 + $0x10] sm:$0xff] %v844_v6  ;;  %860 = sbr.rel (%p1221_p8) target bundleno = 864 (0x360), region = 72 }
 0x2a9   : > { %853 = vst [vmem:[#allocation2 + $0x8] sm:$0xff] %v845_v9 }
 0x2aa   : > { %854 = vst [vmem:[#allocation2 + $0x20] sm:$0xff] %v846_v13 }
 0x2ab   : > { %855 = vst [vmem:[#allocation2 + $0x28] sm:$0xff] %v847_v15 }
 0x2ac   : > { %856 = vst [vmem:[#allocation2 + $0x38] sm:$0xff] %v848_v19 }
 0x2ad   : > { %v1283_v20 = vld [vmem:[%s1753_s9 + $0x38] sm:$0xff]  ;;  %v1282_v21 = vld [vmem:[%s1753_s9 + $0x30] sm:$0xff]  ;;  %v1281_v22 = vld [vmem:[%s1753_s9 + $0x28] sm:$0xff]  ;;  %v861_v31 = vpack.c.bf16 %v842_v39, %v1673_v38  ;;  %v862_v34 = vpack.c.bf16 %v844_v6, %v843_v40  ;;  %v863_v41 = vpack.c.bf16 %v846_v13, %v845_v9  ;;  %v864_v42 = vpack.c.bf16 %v848_v19, %v847_v15 }
 0x2ae   : > { %933 = vmatpush.bf16.msra.mxu0 %v1283_v20  ;;  %1300 = vmatpush.bf16.msra.mxu1 %v1283_v20  ;;  %v1280_v26 = vld [vmem:[%s1753_s9 + $0x20] sm:$0xff]  ;;  %v1279_v27 = vld [vmem:[%s1753_s9 + $0x18] sm:$0xff]  ;;  %v1278_v28 = vld [vmem:[%s1753_s9 + $0x10] sm:$0xff] }
 0x2af   : > { %1301 = vmatpush.bf16.msra.mxu2 %v1283_v20  ;;  %1302 = vmatpush.bf16.msra.mxu3 %v1283_v20  ;;  %v1277_v29 = vld [vmem:[%s1753_s9 + $0x8] sm:$0xff]  ;;  %v1276_v24 = vld [vmem:[%s1753_s9] sm:$0xff]  ;;  %v964_v47 = vld [vmem:[%s1517_s28 + $0x10] sm:$0xff] }
 0x2b0   : > { %v1375_v43 = vld [vmem:[%s1754_s10] ss:$0 sm:$0xff]  ;;  %v968_v55 = vld [vmem:[%s1517_s28 + $0x30] sm:$0xff]  ;;  %v963_v59 = vld [vmem:[%s1517_s28 + $0x8] sm:$0xff] }
 0x2b1   : > { %v962_v45 = vld [vmem:[%s1517_s28] sm:$0xff]  ;;  %v965_v61 = vld [vmem:[%s1517_s28 + $0x18] sm:$0xff]  ;;  %v967_v5 = vld [vmem:[%s1517_s28 + $0x28] sm:$0xff] }
 0x2b2   : > { %934 = vmatpush.bf16.msra.mxu0 %v1282_v21  ;;  %1303 = vmatpush.bf16.msra.mxu1 %v1282_v21  ;;  %v966_v53 = vld [vmem:[%s1517_s28 + $0x20] sm:$0xff]  ;;  %v969_v10 = vld [vmem:[%s1517_s28 + $0x38] sm:$0xff] }
 0x2b3   : > { %1304 = vmatpush.bf16.msra.mxu2 %v1282_v21  ;;  %1305 = vmatpush.bf16.msra.mxu3 %v1282_v21 }
 0x2b6   : > { %935 = vmatpush.bf16.msra.mxu0 %v1281_v22  ;;  %1306 = vmatpush.bf16.msra.mxu1 %v1281_v22 }
 0x2b7   : > { %1307 = vmatpush.bf16.msra.mxu2 %v1281_v22  ;;  %1308 = vmatpush.bf16.msra.mxu3 %v1281_v22 }
 0x2ba   : > { %936 = vmatpush.bf16.msra.mxu0 %v1280_v26  ;;  %1309 = vmatpush.bf16.msra.mxu1 %v1280_v26 }
 0x2bb   : > { %1310 = vmatpush.bf16.msra.mxu2 %v1280_v26  ;;  %1311 = vmatpush.bf16.msra.mxu3 %v1280_v26 }
 0x2be   : > { %937 = vmatpush.bf16.msra.mxu0 %v1279_v27  ;;  %1312 = vmatpush.bf16.msra.mxu1 %v1279_v27 }
 0x2bf   : > { %1313 = vmatpush.bf16.msra.mxu2 %v1279_v27  ;;  %1314 = vmatpush.bf16.msra.mxu3 %v1279_v27 }
 0x2c2   : > { %938 = vmatpush.bf16.msra.mxu0 %v1278_v28  ;;  %1315 = vmatpush.bf16.msra.mxu1 %v1278_v28 }
 0x2c3   : > { %1316 = vmatpush.bf16.msra.mxu2 %v1278_v28  ;;  %1317 = vmatpush.bf16.msra.mxu3 %v1278_v28 }
 0x2c6   : > { %939 = vmatpush.bf16.msra.mxu0 %v1277_v29  ;;  %1318 = vmatpush.bf16.msra.mxu1 %v1277_v29 }
 0x2c7   : > { %1319 = vmatpush.bf16.msra.mxu2 %v1277_v29  ;;  %1320 = vmatpush.bf16.msra.mxu3 %v1277_v29 }
 0x2ca   : > { %940 = vmatpush.bf16.msra.mxu0 %v1276_v24  ;;  %1321 = vmatpush.bf16.msra.mxu1 %v1276_v24 }
 0x2cb   : > { %1322 = vmatpush.bf16.msra.mxu2 %v1276_v24  ;;  %1323 = vmatpush.bf16.msra.mxu3 %v1276_v24 }
 0x2cd   : > { %941 = vmatmul.bf16.vlgmr.msra.gmra.mxu0 %v861_v31  ;;  %946 = vmatmul.bf16.vlgmr.msra.gmra.mxu1 %v862_v34 }
 0x2ce   : > { %951 = vmatmul.bf16.vlgmr.msra.gmra.mxu2 %v863_v41  ;;  %956 = vmatmul.bf16.vlgmr.msra.gmra.mxu3 %v864_v42 }
 0x34a   : > { %v942_v44 = vpop.f32.mrf.mxu0  ;;  %v947_v46 = vpop.f32.mrf.mxu1 }
 0x34b   : > { %v943_v48 = vadd.f32 %v1375_v43, %v942_v44  ;;  %v948_v49 = vadd.f32 %v1375_v43, %v947_v46 }
 0x34d   : > { %v970_v50 = vadd.f32 %v962_v45, %v943_v48  ;;  %v972_v51 = vadd.f32 %v964_v47, %v948_v49 }
 0x34f   : > { %978 = vst [vmem:[%s1560_s0] sm:$0xff] %v970_v50 }
 0x350   : > { %980 = vst [vmem:[%s1560_s0 + $0x10] sm:$0xff] %v972_v51 }
 0x351   : > { %v952_v52 = vpop.f32.mrf.mxu2  ;;  %v957_v54 = vpop.f32.mrf.mxu3 }
 0x352   : > { %v953_v56 = vadd.f32 %v1375_v43, %v952_v52  ;;  %v958_v57 = vadd.f32 %v1375_v43, %v957_v54  ;;  %v944_v58 = vpop.f32.mrf.mxu0  ;;  %v949_v60 = vpop.f32.mrf.mxu1 }
 0x353   : > { %v945_v62 = vadd.f32 %v1375_v43, %v944_v58  ;;  %v950_v63 = vadd.f32 %v1375_v43, %v949_v60 }
 0x354   : > { %v974_v0 = vadd.f32 %v966_v53, %v953_v56  ;;  %v976_v1 = vadd.f32 %v968_v55, %v958_v57 }
 0x355   : > { %v971_v2 = vadd.f32 %v963_v59, %v945_v62  ;;  %v973_v3 = vadd.f32 %v965_v61, %v950_v63 }
 0x356   : > { %982 = vst [vmem:[%s1560_s0 + $0x20] sm:$0xff] %v974_v0 }
 0x357   : > { %984 = vst [vmem:[%s1560_s0 + $0x30] sm:$0xff] %v976_v1 }
 0x358   : > { %979 = vst [vmem:[%s1560_s0 + $0x8] sm:$0xff] %v971_v2 }
 0x359   : > { %981 = vst [vmem:[%s1560_s0 + $0x18] sm:$0xff] %v973_v3  ;;  %v954_v4 = vpop.f32.mrf.mxu2  ;;  %v959_v7 = vpop.f32.mrf.mxu3 }
 0x35a   : > { %v955_v11 = vadd.f32 %v1375_v43, %v954_v4  ;;  %v960_v12 = vadd.f32 %v1375_v43, %v959_v7 }
 0x35c   : > { %v975_v14 = vadd.f32 %v967_v5, %v955_v11  ;;  %v977_v16 = vadd.f32 %v969_v10, %v960_v12 }
 0x35e   : > { %983 = vst [vmem:[%s1560_s0 + $0x28] sm:$0xff] %v975_v14 }
 0x35f   : > { %985 = vst [vmem:[%s1560_s0 + $0x38] sm:$0xff] %v977_v16 }
 0x360 PF: > { %s1770_s1 = sld [smem:[#allocation5_spill]] }
 0x361   : > { %s1771_s17 = sld [smem:[#allocation3_spill]] }
 0x362   : > { %s1772_s18 = sld [smem:[#allocation4_spill]] }
 0x363   : > { %s1773_s19 = sld [smem:[#allocation6_spill]] }
 0x364   : > { %s1774_s20 = sld [smem:[#allocation7_spill]] }
 0x366   : > { %s21_s21 = sadd.s32 1, %s1770_s1  }
 0x367   : > { %p18_p9 = scmp.ge.s32.totalorder %s21_s21, 6  }
 0x369   :  { %20 = sbr.rel (!%p18_p9) target bundleno = 4 (0x4), region = 126 }

</bundles_post_ra>
